<compile_context>
chip_gen: v6e
topology: v6e:2x2x1
jax: 0.10.0
libtpu: 0.0.40
codegen_flags: <defaults>
</compile_context>

<pallas_src>
import functools

import jax
import jax.numpy as jnp
from jax.experimental import pallas as pl
from jax.experimental.pallas import tpu as pltpu


def _round_up(x, m):
    return (x + m - 1) // m * m


def _vmem_capacity_bytes():
    """Physical per-core VMEM (v5e/v6e: 128 MiB, v7x: 64 MiB)."""
    try:
        cap = int(getattr(pltpu.get_tpu_info(), "vmem_capacity_bytes", 0))
        if cap > 0:
            return cap
    except Exception:
        pass
    return 64 * 1024 * 1024  # conservative fallback (v7x per-TensorCore)


def _choose_tiling(M, Kpad, Npad, budget):
    """Pick (tn, tk, x_resident) so the double-buffered live set fits `budget`."""
    qn = 256 if Npad % 256 == 0 else 128          # v6e/v7x MXU is 2x256x256
    if Kpad % 256 == 0:
        tk_opts = [t for t in range(min(Kpad, 2048), 0, -256) if Kpad % t == 0]
    else:
        tk_opts = [Kpad]                           # small / irregular K: one block
    tn_all = [t for t in range(min(Npad, 2048), 0, -qn) if Npad % t == 0]
    # v7x megacore: prefer >= 2 tiles on the "parallel" feature axis when possible.
    tn_opts = [t for t in tn_all if Npad // t >= 2] or tn_all

    def live_bytes(tn, tk, x_res):
        x_b = 2 * M * (Kpad if x_res else tk) * 2  # bf16, double-buffered
        w_b = 2 * tk * tn * 2                      # bf16 weights
        o_b = 2 * M * tn * 4                       # f32 output doubles as accumulator
        s_b = 2 * 2 * tn * 4                       # gamma + beta
        return x_b + w_b + o_b + s_b

    prefer_resident = (2 * M * Kpad * 2) <= budget // 3
    for x_res in ((True, False) if prefer_resident else (False,)):
        for tn in tn_opts:
            for tk in tk_opts:
                if live_bytes(tn, tk, x_res) <= budget:
                    return tn, tk, x_res
    # TODO(synk): for very large M, tile the batch axis with a two-pass BatchNorm
    # (per-feature sum / sum-of-squares accumulation + a normalize kernel); the
    # whole-batch design below needs a full (M, tn) f32 slab resident in VMEM.
    return tn_all[-1], tk_opts[-1], False


# ---------------------------------------------------------------------------
# Fused kernel: o += x_tile @ w_tile ; on last K step do BN(batch stats)+ReLU
# ---------------------------------------------------------------------------
def _mlpact_kernel(x_ref, w_ref, g_ref, b_ref, o_ref, *, eps, tk, x_sliced):
    # x_ref: (M, tk) or (M, Kpad) bf16   w_ref: (tk, tn) bf16
    # g_ref/b_ref: (1, tn) f32           o_ref: (M, tn) f32 (also the accumulator)
    k = pl.program_id(1)
    nk = pl.num_programs(1)

    if x_sliced:
        start = pl.multiple_of(k * tk, tk)
        x_blk = x_ref[:, pl.ds(start, tk)]
    else:
        x_blk = x_ref[...]

    partial = jnp.dot(x_blk, w_ref[...], preferred_element_type=jnp.float32)

    @pl.when(k == 0)
    def _():
        o_ref[...] = partial            # direct assign: no zero-init + add pass

    @pl.when(k > 0)
    def _():
        o_ref[...] += partial

    @pl.when(k == nk - 1)
    def _():
        acc = o_ref[...]                                        # (M, tn) f32
        mean = jnp.mean(acc, axis=0, keepdims=True)             # per-feature mean
        centered = acc - mean                                   # reused for var & y
        var = jnp.mean(centered * centered, axis=0, keepdims=True)  # biased var
        inv = jax.lax.rsqrt(var + eps)                          # EUP rsqrt
        y = centered * (inv * g_ref[...]) + b_ref[...]
        o_ref[...] = jnp.maximum(y, 0.0)


# ---------------------------------------------------------------------------
# Wrappers
# ---------------------------------------------------------------------------
def prepare_mlpact_params(linear_w, gamma, beta):
    """Hoist weight transpose / bf16 cast / padding out of the per-call path."""
    N, K = linear_w.shape
    Npad = _round_up(max(N, 128), 128)                 # lane-dense output channels
    Kpad = K if K <= 1024 else _round_up(K, 256)
    w = jnp.transpose(linear_w, (1, 0)).astype(jnp.bfloat16)   # (K, N)
    w = jnp.pad(w, ((0, Kpad - K), (0, Npad - N)))
    g = jnp.pad(gamma.astype(jnp.float32), (0, Npad - N),
                constant_values=1.0).reshape(1, Npad)
    b = jnp.pad(beta.astype(jnp.float32), (0, Npad - N)).reshape(1, Npad)
    return {"w": w, "gamma": g, "beta": b, "K": K, "N": N,
            "Kpad": Kpad, "Npad": Npad}


def mlpact_forward(x, params, *, eps=1e-5):
    """relu(batchnorm1d(x @ W.T)) in training mode (batch statistics)."""
    M, K = x.shape
    assert K == params["K"], (K, params["K"])
    Kpad, Npad, N = params["Kpad"], params["Npad"], params["N"]

    cap = _vmem_capacity_bytes()
    vmem_limit = min(int(cap * 0.9), 100 * 1024 * 1024)
    budget = int(vmem_limit * 0.9)                    # headroom for compiler scratch
    tn, tk, x_resident = _choose_tiling(M, Kpad, Npad, budget)
    x_sliced = x_resident and (Kpad != tk)

    xb = x.astype(jnp.bfloat16)
    if Kpad != K:
        xb = jnp.pad(xb, ((0, 0), (0, Kpad - K)))

    grid = (Npad // tn, Kpad // tk)
    if x_resident:
        x_spec = pl.BlockSpec((M, Kpad), lambda j, k: (0, 0))   # single HBM read
    else:
        x_spec = pl.BlockSpec((M, tk), lambda j, k: (0, k))

    out = pl.pallas_call(
        functools.partial(_mlpact_kernel, eps=eps, tk=tk, x_sliced=x_sliced),
        out_shape=jax.ShapeDtypeStruct((M, Npad), jnp.float32),
        grid_spec=pltpu.PrefetchScalarGridSpec(
            num_scalar_prefetch=0,
            grid=grid,
            in_specs=[
                x_spec,                                         # x
                pl.BlockSpec((tk, tn), lambda j, k: (k, j)),    # W
                pl.BlockSpec((1, tn), lambda j, k: (0, j)),     # gamma
                pl.BlockSpec((1, tn), lambda j, k: (0, j)),     # beta
            ],
            out_specs=pl.BlockSpec((M, tn), lambda j, k: (0, j)),
        ),
        compiler_params=pltpu.CompilerParams(
            dimension_semantics=("parallel", "arbitrary"),
            vmem_limit_bytes=vmem_limit,
        ),
    )(xb, params["w"], params["gamma"], params["beta"])

    return out[:, :N]


# ---------------------------------------------------------------------------
# Pure-JAX reference (same bf16 matmul precision, f32 stats) for sanity check
# ---------------------------------------------------------------------------
def mlpact_reference(x, linear_w, gamma, beta, *, eps=1e-5):
    y = jnp.dot(
        x.astype(jnp.bfloat16),
        jnp.transpose(linear_w, (1, 0)).astype(jnp.bfloat16),
        preferred_element_type=jnp.float32,
    )
    mean = jnp.mean(y, axis=0, keepdims=True)
    c = y - mean
    var = jnp.mean(c * c, axis=0, keepdims=True)
    out = c * jax.lax.rsqrt(var + eps) * gamma.reshape(1, -1) + beta.reshape(1, -1)
    return jnp.maximum(out, 0.0)


if __name__ == "__main__":
    # Small shapes consistent with MLPact(in_dim=32, out_dim=32), batch=8.
    M, in_dim, out_dim = 8, 32, 32

    key = jax.random.PRNGKey(0)
    kx, kw, kg, kb = jax.random.split(key, 4)
    x = jax.random.normal(kx, (M, in_dim), dtype=jnp.float32)
    w = jax.random.normal(kw, (out_dim, in_dim), dtype=jnp.float32) * 0.1
    gamma = 1.0 + 0.1 * jax.random.normal(kg, (out_dim,), dtype=jnp.float32)
    beta = 0.1 * jax.random.normal(kb, (out_dim,), dtype=jnp.float32)

    params = prepare_mlpact_params(w, gamma, beta)      # weight prep hoisted
    out = jax.block_until_ready(mlpact_forward(x, params))
    ref = jax.block_until_ready(mlpact_reference(x, w, gamma, beta))

    assert out.shape == (M, out_dim), out.shape
    err = float(jnp.max(jnp.abs(out - ref)))
    assert jnp.allclose(out, ref, rtol=2e-3, atol=2e-3), err
    # TODO(synk): nn.BatchNorm1d also updates running_mean/running_var in training
    # mode; that buffer bookkeeping does not affect this forward output and is not
    # implemented here.
    print("KERNEL_OK")
</pallas_src>

<mosaic_0001>
module attributes {stable_mosaic.version = 11 : i64} {
  func.func @_mlpact_kernel(%arg0: i32, %arg1: i32, %arg2: memref<8x32xbf16, #tpu.memory_space<vmem>>, %arg3: memref<32x128xbf16, #tpu.memory_space<vmem>>, %arg4: memref<1x128xf32, #tpu.memory_space<vmem>>, %arg5: memref<1x128xf32, #tpu.memory_space<vmem>>, %arg6: memref<8x128xf32, #tpu.memory_space<vmem>>) attributes {dimension_semantics = [#tpu.dimension_semantics<parallel>, #tpu.dimension_semantics<arbitrary>], iteration_bounds = array<i64: 1, 1>, scalar_prefetch = 0 : i64, scratch_operands = 0 : i64, tpu.core_type = #tpu.core_type<tc>, window_params = [{pipeline_mode = #tpu.pipeline_mode<synchronous>, transform_indices = @transform_0, window_bounds = array<i64: 8, 32>}, {transform_indices = @transform_1, window_bounds = array<i64: 32, 128>}, {transform_indices = @transform_2, window_bounds = array<i64: 1, 128>}, {transform_indices = @transform_3, window_bounds = array<i64: 1, 128>}, {transform_indices = @transform_4, window_bounds = array<i64: 8, 128>}]} {
    %c0 = arith.constant 0 : index
    %c0_0 = arith.constant 0 : index
    %0 = vector.load %arg2[%c0, %c0_0] : memref<8x32xbf16, #tpu.memory_space<vmem>>, vector<8x32xbf16>
    %c0_1 = arith.constant 0 : index
    %c0_2 = arith.constant 0 : index
    %1 = vector.load %arg3[%c0_1, %c0_2] : memref<32x128xbf16, #tpu.memory_space<vmem>>, vector<32x128xbf16>
    %cst = arith.constant dense<0.000000e+00> : vector<8x128xf32>
    %2 = tpu.matmul %0, %1, %cst {dimension_numbers = #tpu.dot_dimension_numbers<[1], [0], [0], [1], [0, 0, 1, 1], [], []>} : vector<8x32xbf16>, vector<32x128xbf16>, vector<8x128xf32> -> vector<8x128xf32>
    %c0_i32 = arith.constant 0 : i32
    %3 = arith.cmpi eq, %arg1, %c0_i32 : i32
    %4 = arith.extui %3 : i1 to i32
    %c0_i32_3 = arith.constant 0 : i32
    %5 = arith.cmpi ne, %4, %c0_i32_3 : i32
    scf.if %5 {
      %c0_8 = arith.constant 0 : index
      %c0_9 = arith.constant 0 : index
      %12 = vector.load %arg6[%c0_8, %c0_9] : memref<8x128xf32, #tpu.memory_space<vmem>>, vector<8x128xf32>
      tpu.vector_store %arg6[%c0_8, %c0_9], %2 {strides = array<i32>} : memref<8x128xf32, #tpu.memory_space<vmem>>, vector<8x128xf32>,
    } else {
    }
    %c0_i32_4 = arith.constant 0 : i32
    %6 = arith.cmpi sgt, %arg1, %c0_i32_4 : i32
    %7 = arith.extui %6 : i1 to i32
    %c0_i32_5 = arith.constant 0 : i32
    %8 = arith.cmpi ne, %7, %c0_i32_5 : i32
    scf.if %8 {
      %c0_8 = arith.constant 0 : index
      %c0_9 = arith.constant 0 : index
      %12 = vector.load %arg6[%c0_8, %c0_9] : memref<8x128xf32, #tpu.memory_space<vmem>>, vector<8x128xf32>
      %13 = arith.addf %12, %2 : vector<8x128xf32>
      %c0_10 = arith.constant 0 : index
      %c0_11 = arith.constant 0 : index
      %14 = vector.load %arg6[%c0_10, %c0_11] : memref<8x128xf32, #tpu.memory_space<vmem>>, vector<8x128xf32>
      tpu.vector_store %arg6[%c0_10, %c0_11], %13 {strides = array<i32>} : memref<8x128xf32, #tpu.memory_space<vmem>>, vector<8x128xf32>,
    } else {
    }
    %c0_i32_6 = arith.constant 0 : i32
    %9 = arith.cmpi eq, %arg1, %c0_i32_6 : i32
    %10 = arith.extui %9 : i1 to i32
    %c0_i32_7 = arith.constant 0 : i32
    %11 = arith.cmpi ne, %10, %c0_i32_7 : i32
    scf.if %11 {
      %c0_8 = arith.constant 0 : index
      %c0_9 = arith.constant 0 : index
      %12 = vector.load %arg6[%c0_8, %c0_9] : memref<8x128xf32, #tpu.memory_space<vmem>>, vector<8x128xf32>
      %cst_10 = arith.constant dense<0.000000e+00> : vector<128xf32>
      %13 = vector.multi_reduction <add>, %12, %cst_10 [0] : vector<8x128xf32> to vector<128xf32>
      %14 = vector.shape_cast %13 : vector<128xf32> to vector<1x128xf32>
      %cst_11 = arith.constant 8.000000e+00 : f32
      %15 = vector.broadcast %cst_11 : f32 to vector<1x128xf32>
      %16 = arith.divf %14, %15 : vector<1x128xf32>
      %17 = vector.broadcast %16 : vector<1x128xf32> to vector<8x128xf32>
      %18 = arith.subf %12, %17 : vector<8x128xf32>
      %19 = arith.mulf %18, %18 : vector<8x128xf32>
      %cst_12 = arith.constant dense<0.000000e+00> : vector<128xf32>
      %20 = vector.multi_reduction <add>, %19, %cst_12 [0] : vector<8x128xf32> to vector<128xf32>
      %21 = vector.shape_cast %20 : vector<128xf32> to vector<1x128xf32>
      %cst_13 = arith.constant 8.000000e+00 : f32
      %22 = vector.broadcast %cst_13 : f32 to vector<1x128xf32>
      %23 = arith.divf %21, %22 : vector<1x128xf32>
      %cst_14 = arith.constant 9.99999974E-6 : f32
      %24 = vector.broadcast %cst_14 : f32 to vector<1x128xf32>
      %25 = arith.addf %23, %24 : vector<1x128xf32>
      %26 = math.rsqrt %25 : vector<1x128xf32>
      %c0_15 = arith.constant 0 : index
      %c0_16 = arith.constant 0 : index
      %27 = vector.load %arg4[%c0_15, %c0_16] : memref<1x128xf32, #tpu.memory_space<vmem>>, vector<1x128xf32>
      %28 = arith.mulf %26, %27 : vector<1x128xf32>
      %29 = vector.broadcast %28 : vector<1x128xf32> to vector<8x128xf32>
      %30 = arith.mulf %18, %29 : vector<8x128xf32>
      %c0_17 = arith.constant 0 : index
      %c0_18 = arith.constant 0 : index
      %31 = vector.load %arg5[%c0_17, %c0_18] : memref<1x128xf32, #tpu.memory_space<vmem>>, vector<1x128xf32>
      %32 = vector.broadcast %31 : vector<1x128xf32> to vector<8x128xf32>
      %33 = arith.addf %30, %32 : vector<8x128xf32>
      %cst_19 = arith.constant 0.000000e+00 : f32
      %34 = vector.broadcast %cst_19 : f32 to vector<8x128xf32>
      %35 = arith.maximumf %33, %34 : vector<8x128xf32>
      %c0_20 = arith.constant 0 : index
      %c0_21 = arith.constant 0 : index
      %36 = vector.load %arg6[%c0_20, %c0_21] : memref<8x128xf32, #tpu.memory_space<vmem>>, vector<8x128xf32>
      tpu.vector_store %arg6[%c0_20, %c0_21], %35 {strides = array<i32>} : memref<8x128xf32, #tpu.memory_space<vmem>>, vector<8x128xf32>,
    } else {
    }
    return
  }
  func.func @transform_0(%arg0: i32, %arg1: i32) -> (i32, i32) {
    %c0_i32 = arith.constant 0 : i32
    %c0_i32_0 = arith.constant 0 : i32
    %c0_i32_1 = arith.constant 0 : i32
    return %c0_i32, %c0_i32_0 : i32, i32
  }
  func.func @transform_1(%arg0: i32, %arg1: i32) -> (i32, i32) {
    %c0_i32 = arith.constant 0 : i32
    return %arg1, %arg0 : i32, i32
  }
  func.func @transform_2(%arg0: i32, %arg1: i32) -> (i32, i32) {
    %c0_i32 = arith.constant 0 : i32
    %c0_i32_0 = arith.constant 0 : i32
    return %c0_i32, %arg0 : i32, i32
  }
  func.func @transform_3(%arg0: i32, %arg1: i32) -> (i32, i32) {
    %c0_i32 = arith.constant 0 : i32
    %c0_i32_0 = arith.constant 0 : i32
    return %c0_i32, %arg0 : i32, i32
  }
  func.func @transform_4(%arg0: i32, %arg1: i32) -> (i32, i32) {
    %c0_i32 = arith.constant 0 : i32
    %c0_i32_0 = arith.constant 0 : i32
    return %c0_i32, %arg0 : i32, i32
  }
}

</mosaic_0001>

<bundles_post_ra>
// kernel: tpu_custom_call.1
= control target key start
LH: loop header
LB: loop body
LE: loop exit
PB: predicated region body
PF: predicated region fallthrough
CT: control target
= control target key end

     0   :  { %9 = vsyncpa [#allocation3], 0  ;;  %s313_s0 = inlined_call_operand.hbm [shape: bf16[8,32], index: 0, kind: input, shape index: {}]   ;;  %s314_s1 = inlined_call_operand.hbm [shape: bf16[32,128], index: 1, kind: input, shape index: {}]   ;;  %s315_s2 = inlined_call_operand.vmem [shape: f32[1,128], index: 2, kind: input, shape index: {}]   ;;  %s316_s3 = inlined_call_operand.vmem [shape: f32[1,128], index: 3, kind: input, shape index: {}]   ;;  %s317_s4 = inlined_call_operand.hbm [shape: f32[8,128], index: 4, kind: output, shape index: {}]  }
   0x1   :  { %10 = vsyncpa [#allocation6], 0 }
   0x2   :  { %11 = vsyncpa [#allocation4], 0  ;;  %s266_s15 = smov [#allocation2]   ;;  %s267_s17 = smov [#allocation5]  }
   0x3   :  { %s18_s16 = sshll.u32 %s266_s15, 4  ;;  %s27_s18 = sshll.u32 %s267_s17, 4  ;;  %s19_s16 = int_to_ptr.vmem [resolvable:$true] %s18_s16  ;;  %s28_s18 = int_to_ptr.vmem [resolvable:$true] %s27_s18 }
   0x4   :  { %s208_s19 = scalar_lea.vmem %s19_s16, 64  ;;  %p213_p1 = scmp.lt.s32.totalorder %s19_s16, %s19_s16 }
   0x5   :  { %p209_p0 = scmp.ne.s32.totalorder %s19_s16, %s208_s19  ;;  %p214_p2 = scmp.lt.s32.totalorder %s208_s19, %s208_s19 }
   0x7   :  { %p215_p3 = por %p214_p2, %p213_p1 }
   0x9   :  { %p216_p4 = pnand %p215_p3, %p209_p0 }
   0xb   :  { %219 = shalt.err (!%p216_p4)
}
   0xc   :  { %21 = dma.hbm_to_vmem [thread:$0]  %s313_s0, 64, %s19_s16, [#allocation3]  }
   0xd   :  { %s228_s22 = scalar_lea.vmem %s28_s18, 256  ;;  %p233_p6 = scmp.lt.s32.totalorder %s28_s18, %s28_s18 }
   0xe   :  { %p229_p5 = scmp.ne.s32.totalorder %s28_s18, %s228_s22  ;;  %p234_p7 = scmp.lt.s32.totalorder %s228_s22, %s228_s22 }
  0x10   :  { %p235_p8 = por %p234_p7, %p233_p6 }
  0x12   :  { %p236_p9 = pnand %p235_p8, %p229_p5 }
  0x14   :  { %239 = shalt.err (!%p236_p9)
}
  0x15   :  { %s268_s23 = smov 64   ;;  %s269_s24 = smov 4  }
  0x16   :  { %33 = dma.hbm_to_vmem [thread:$0]  %s314_s1, 256, %s28_s18, [#allocation6], %s268_s23, %s268_s23, %s269_s24  }
  0x17   :  { %260 = dma.done.wait [#allocation3], 64  }
  0x18   :  { %261 = vsyncadd [#allocation3], 4294967232 }
  0x19   :  { %262 = dma.done.wait [#allocation6], 256  }
  0x1a   :  { %263 = vsyncadd [#allocation6], 4294967040  ;;  %v270_v0 = vmov 0.0   ;;  %vm271_vm0 = vmmov 0   ;;  %v196_v1 = vld [vmem:[#allocation5 + $0x8] sm:$0xff]   ;;  %v197_v2 = vld [vmem:[#allocation5] sm:$0xff]   ;;  %v143_v25 = vlaneseq }
  0x1b   :  { %181 = vmatprep.subr.bf16.mxu0 %v270_v0  ;;  %185 = vmatprep.mubr.msk.bf16.mxu0 %vm271_vm0, %v270_v0  ;;  %v45_v3 = vld [vmem:[#allocation2] sm:$0xf]  ;;  %vm62_vm1 = vcmask 261120   ;;  %s272_s29 = smov [#allocation7]  }
  0x1c   :  { %182 = vmatpush3.bf16.msra.mxu0 %v196_v1  ;;  %v144_v26 = vshrl.u32 %v143_v25, 7  ;;  %v141_v27 = vld [vmem:[%s315_s2] sm:$0x1]  ;;  %s164_s30 = sshll.u32 %s272_s29, 4  ;;  %s165_s30 = int_to_ptr.vmem [resolvable:$true] %s164_s30 }
  0x1d   :  { %183 = vmatprep.subr.bf16.mxu0 %v270_v0  ;;  %v177_v32 = vld [vmem:[%s316_s3] ss:$0 sm:$0xff]  ;;  %s240_s5 = scalar_lea.vmem %s165_s30, 128  ;;  %p245_p11 = scmp.lt.s32.totalorder %s165_s30, %s165_s30 }
  0x1e   :  { %v145_v28 = vsub.s32 0, %v144_v26  ;;  %p241_p10 = scmp.ne.s32.totalorder %s165_s30, %s240_s5  ;;  %p246_p12 = scmp.lt.s32.totalorder %s240_s5, %s240_s5 }
  0x20   :  { %184 = vmatpush3.bf16.msra.mxu0 %v197_v2  ;;  %p247_p13 = por %p246_p12, %p245_p11 }
  0x22   :  { %p248_p0 = pnand %p247_p13, %p241_p10 }
  0x23   :  { %186 = vmatmul.mubr.msk.bf16.vlgmr.msra.gmra.mxu0 %vm62_vm1, %v45_v3 }
  0xe3   :  { %v100_v4 = vpop.f32.mrf.mxu0 }
  0xe4   :  { %v122_v5 = vrot.slane %v100_v4, 4 }
  0xe5   :  { %v187_v6 = vpop.f32.mrf.mxu0 }
  0xe6   :  { %v123_v7 = vadd.f32 %v122_v5, %v100_v4 }
  0xe7   :  { %v103_v8 = vpop.f32.mrf.mxu0 }
  0xe8   :  { %v124_v9 = vrot.slane %v123_v7, 2 }
  0xe9   :  { %v188_v10 = vpop.f32.mrf.mxu0 }
  0xea   :  { %v125_v11 = vadd.f32 %v124_v9, %v123_v7 }
  0xec   :  { %v126_v12 = vrot.slane %v125_v11, 1 }
  0xee   :  { %v127_v13 = vadd.f32 %v126_v12, %v125_v11 }
  0xf0   :  { %v129_v14 = vmul.f32 0.125, %v127_v13 }
  0xf2   :  { %v130_v15 = vsub.f32 %v100_v4, %v129_v14 }
  0xf4   :  { %v131_v16 = vmul.f32 %v130_v15, %v130_v15 }
  0xf6   :  { %v132_v17 = vrot.slane %v131_v16, 4 }
  0xf8   :  { %v133_v18 = vadd.f32 %v132_v17, %v131_v16 }
  0xfa   :  { %v134_v19 = vrot.slane %v133_v18, 2 }
  0xfc   :  { %v135_v20 = vadd.f32 %v134_v19, %v133_v18 }
  0xfe   :  { %v136_v21 = vrot.slane %v135_v20, 1 }
 0x100   :  { %v137_v22 = vadd.f32 %v136_v21, %v135_v20 }
 0x102   :  { %v138_v23 = vmul.f32 0.125, %v137_v22 }
 0x104   :  { %v139_v24 = vadd.f32 1e-05, %v138_v23 }
 0x106   :  { %198 = vrsqrt.f32 %v139_v24 }
 0x113   :  { %v199_v29 = vpop.eup %198 }
 0x114   :  { %v142_v30 = vmul.f32 %v199_v29, %v141_v27 }
 0x116   :  { %v146_v31 = vrot.slane %v142_v30, %v145_v28 }
 0x118   :  { %v147_v33 = vmul.f32 %v146_v31, %v130_v15 }
 0x11a   :  { %v155_v34 = vadd.f32 %v177_v32, %v147_v33 }
 0x11c   :  { %v156_v35 = vmax.f32 %v155_v34, 0.0 }
 0x11e   :  { %157 = vst [vmem:[#allocation7] sm:$0xff] %v156_v35 }
 0x11f   :  { %251 = shalt.err (!%p248_p0)
}
 0x120   :  { %167 = dma.vmem_to_hbm [thread:$0]  %s165_s30, 128, %s317_s4, [#allocation4]  }
 0x121   :  { %264 = dma.done.wait [#allocation4], 128  }
 0x122   :  { %265 = vsyncadd [#allocation4], 4294967168 }
 0x123   :  { %171 = vsyncpa [#allocation3], 1 }
 0x124   :  { %172 = vsyncpa [#allocation6], 1 }
 0x125   :  { %173 = vsyncpa [#allocation4], 1 }

</bundles_post_ra>
